<compile_context>
chip_gen: v7x
topology: tpu7x:2x2x1
jax: 0.10.0
libtpu: 0.0.40
codegen_flags: <defaults>
</compile_context>

<pallas_src>
import functools
import math

import jax
import jax.numpy as jnp
from jax.experimental import pallas as pl
from jax.experimental.pallas import tpu as pltpu


def _default_vmem_limit():
    """Generation-aware VMEM budget: ~40 MiB on v7x (64 MiB VMEM), ~80 MiB on v5e/v6e."""
    cap = None
    try:
        cap = getattr(pltpu.get_tpu_info(), "vmem_capacity_bytes", None)
    except Exception:
        cap = None
    if not cap:
        cap = 64 * 1024 * 1024  # conservative fallback (v7x per-TC VMEM)
    return min(int(cap * 0.65), 100 * 1024 * 1024)


_VMEM_LIMIT = _default_vmem_limit()


def _tile(dim, target, align):
    """Largest block size <= target that divides dim and is `align`-aligned, else full dim."""
    if dim <= target:
        return dim
    t = (target // align) * align
    while t >= align:
        if dim % t == 0:
            return t
        t -= align
    return dim  # fallback: full dim (only for awkward, non-power-of-two dims)


# ----------------------------- gridded matmul (+bias, +activation) -----------------------------

def _matmul_kernel(x_ref, w_ref, *rest, activation, has_bias):
    if has_bias:
        b_ref, o_ref, acc_ref = rest
    else:
        b_ref = None
        o_ref, acc_ref = rest

    @pl.when(pl.program_id(2) == 0)
    def _init():
        acc_ref[...] = jnp.zeros_like(acc_ref)

    acc_ref[...] += jnp.dot(x_ref[...], w_ref[...],
                            preferred_element_type=jnp.float32)

    @pl.when(pl.program_id(2) == pl.num_programs(2) - 1)
    def _flush():
        y = acc_ref[...]
        if b_ref is not None:
            y = y + b_ref[...].astype(jnp.float32)
        if activation == "relu":
            y = jnp.maximum(y, 0.0)
        o_ref[...] = y.astype(o_ref.dtype)


def matmul_bias(x, w, b=None, activation=None, out_dtype=jnp.bfloat16,
                tm=512, tn=1024, tk=1024):
    """x: (M, K) bf16, w: (K, N) bf16, b: (1, N) f32 -> (M, N) out_dtype."""
    M, K = x.shape
    N = w.shape[1]
    tm = _tile(M, tm, 8)
    tn = _tile(N, tn, 128)
    tk = _tile(K, tk, 128)
    grid = (M // tm, N // tn, K // tk)

    in_specs = [
        pl.BlockSpec((tm, tk), lambda i, j, k: (i, k)),
        pl.BlockSpec((tk, tn), lambda i, j, k: (k, j)),
    ]
    args = [x, w]
    if b is not None:
        in_specs.append(pl.BlockSpec((1, tn), lambda i, j, k: (0, j)))
        args.append(b)

    return pl.pallas_call(
        functools.partial(_matmul_kernel, activation=activation,
                          has_bias=b is not None),
        out_shape=jax.ShapeDtypeStruct((M, N), out_dtype),
        grid=grid,
        in_specs=in_specs,
        out_specs=pl.BlockSpec((tm, tn), lambda i, j, k: (i, j)),
        scratch_shapes=[pltpu.VMEM((tm, tn), jnp.float32)],
        compiler_params=pltpu.CompilerParams(
            dimension_semantics=("parallel", "parallel", "arbitrary"),
            vmem_limit_bytes=_VMEM_LIMIT),
    )(*args)


# ------------------- matmul + bias + residual-add + LayerNorm (fused flush) -------------------

def _matmul_add_ln_kernel(x_ref, w_ref, b_ref, r_ref, g_ref, beta_ref,
                          o_ref, acc_ref, *, eps):
    @pl.when(pl.program_id(1) == 0)
    def _init():
        acc_ref[...] = jnp.zeros_like(acc_ref)

    acc_ref[...] += jnp.dot(x_ref[...], w_ref[...],
                            preferred_element_type=jnp.float32)

    @pl.when(pl.program_id(1) == pl.num_programs(1) - 1)
    def _flush():
        y = (acc_ref[...] + b_ref[...].astype(jnp.float32)
             + r_ref[...].astype(jnp.float32))
        mean = jnp.mean(y, axis=-1, keepdims=True)
        var = jnp.mean(jnp.square(y - mean), axis=-1, keepdims=True)
        yn = (y - mean) * jax.lax.rsqrt(var + eps)
        o_ref[...] = (yn * g_ref[...].astype(jnp.float32)
                      + beta_ref[...].astype(jnp.float32)).astype(o_ref.dtype)


def matmul_add_ln(x, w, b, r, g, beta, eps=1e-5, tm=256, tk=1024):
    """LayerNorm(r + x @ w + b); x: (M, K), w: (K, N), r: (M, N). N kept whole per tile."""
    M, K = x.shape
    N = w.shape[1]
    tm = _tile(M, tm, 8)
    tk = _tile(K, tk, 128)
    grid = (M // tm, K // tk)
    return pl.pallas_call(
        functools.partial(_matmul_add_ln_kernel, eps=eps),
        out_shape=jax.ShapeDtypeStruct((M, N), x.dtype),
        grid=grid,
        in_specs=[
            pl.BlockSpec((tm, tk), lambda i, k: (i, k)),
            pl.BlockSpec((tk, N), lambda i, k: (k, 0)),
            pl.BlockSpec((1, N), lambda i, k: (0, 0)),
            pl.BlockSpec((tm, N), lambda i, k: (i, 0)),   # residual
            pl.BlockSpec((1, N), lambda i, k: (0, 0)),    # gamma
            pl.BlockSpec((1, N), lambda i, k: (0, 0)),    # beta
        ],
        out_specs=pl.BlockSpec((tm, N), lambda i, k: (i, 0)),
        scratch_shapes=[pltpu.VMEM((tm, N), jnp.float32)],
        compiler_params=pltpu.CompilerParams(
            dimension_semantics=("parallel", "arbitrary"),
            vmem_limit_bytes=_VMEM_LIMIT),
    )(x, w, b, r, g, beta)


# ---------------- fused FFN: LayerNorm(x + relu(x@w1+b1) @ w2 + b2), intermediate in VMEM ----------------

def _ffn_ln_kernel(x_ref, w1_ref, b1_ref, w2_ref, b2_ref, g_ref, beta_ref,
                   o_ref, acc_ref, *, eps):
    @pl.when(pl.program_id(1) == 0)
    def _init():
        acc_ref[...] = jnp.zeros_like(acc_ref)

    h = jnp.dot(x_ref[...], w1_ref[...], preferred_element_type=jnp.float32)
    h = jnp.maximum(h + b1_ref[...].astype(jnp.float32), 0.0)
    acc_ref[...] += jnp.dot(h.astype(w2_ref.dtype), w2_ref[...],
                            preferred_element_type=jnp.float32)

    @pl.when(pl.program_id(1) == pl.num_programs(1) - 1)
    def _flush():
        # residual = the (tm, D) x block itself (resident across the F axis)
        y = (acc_ref[...] + b2_ref[...].astype(jnp.float32)
             + x_ref[...].astype(jnp.float32))
        mean = jnp.mean(y, axis=-1, keepdims=True)
        var = jnp.mean(jnp.square(y - mean), axis=-1, keepdims=True)
        yn = (y - mean) * jax.lax.rsqrt(var + eps)
        o_ref[...] = (yn * g_ref[...].astype(jnp.float32)
                      + beta_ref[...].astype(jnp.float32)).astype(o_ref.dtype)


def ffn_add_ln(x, w1, b1, w2, b2, g, beta, eps=1e-5, tm=512, tf=1024):
    """x: (M, D) bf16, w1: (D, F), w2: (F, D); (M, F) intermediate never hits HBM; LN fused."""
    M, D = x.shape
    F = w1.shape[1]
    tm = _tile(M, tm, 8)
    tf = _tile(F, tf, 128)
    grid = (M // tm, F // tf)
    return pl.pallas_call(
        functools.partial(_ffn_ln_kernel, eps=eps),
        out_shape=jax.ShapeDtypeStruct((M, D), x.dtype),
        grid=grid,
        in_specs=[
            pl.BlockSpec((tm, D), lambda i, f: (i, 0)),
            pl.BlockSpec((D, tf), lambda i, f: (0, f)),
            pl.BlockSpec((1, tf), lambda i, f: (0, f)),
            pl.BlockSpec((tf, D), lambda i, f: (f, 0)),
            pl.BlockSpec((1, D), lambda i, f: (0, 0)),
            pl.BlockSpec((1, D), lambda i, f: (0, 0)),
            pl.BlockSpec((1, D), lambda i, f: (0, 0)),
        ],
        out_specs=pl.BlockSpec((tm, D), lambda i, f: (i, 0)),
        scratch_shapes=[pltpu.VMEM((tm, D), jnp.float32)],
        compiler_params=pltpu.CompilerParams(
            dimension_semantics=("parallel", "arbitrary"),
            vmem_limit_bytes=_VMEM_LIMIT),
    )(x, w1, b1, w2, b2, g, beta)


# ----------------------------- flash multi-head attention -----------------------------

def _mha_kernel(q_ref, k_ref, v_ref, *rest, n_heads, scale, has_bias):
    if has_bias:
        bias_ref, o_ref, m_sc, l_sc, acc_sc = rest
    else:
        bias_ref = None
        o_ref, m_sc, l_sc, acc_sc = rest

    kv_step = pl.program_id(2)

    @pl.when(kv_step == 0)
    def _init():
        m_sc[...] = jnp.full_like(m_sc, -1e30)
        l_sc[...] = jnp.zeros_like(l_sc)
        acc_sc[...] = jnp.zeros_like(acc_sc)

    q = q_ref[0]                        # (tq, D) bf16
    k = k_ref[0]                        # (tk, D) bf16
    v = v_ref[0]                        # (tk, D) bf16
    bias = bias_ref[0].astype(jnp.float32) if has_bias else None   # (tq, tk)
    D = q.shape[-1]
    Dh = D // n_heads

    for h in range(n_heads):            # static loop; head = column slice of the QKV slab
        sl = slice(h * Dh, (h + 1) * Dh)
        # fold softmax scale into the (tq, Dh) q tile (cheaper than scaling (tq, tk) scores)
        qh = (q[:, sl].astype(jnp.float32) * scale).astype(k.dtype)
        kh = k[:, sl]
        vh = v[:, sl]
        s = jax.lax.dot_general(qh, kh, (((1,), (1,)), ((), ())),
                                preferred_element_type=jnp.float32)  # (tq, tk)
        if bias is not None:
            s = s + bias
        m_prev = m_sc[:, h:h + 1]
        m_new = jnp.maximum(m_prev, jnp.max(s, axis=-1, keepdims=True))
        alpha = jnp.exp(m_prev - m_new)
        p = jnp.exp(s - m_new)
        l_sc[:, h:h + 1] = alpha * l_sc[:, h:h + 1] + jnp.sum(p, axis=-1, keepdims=True)
        acc_sc[:, sl] = alpha * acc_sc[:, sl] + jnp.dot(
            p.astype(v.dtype), vh, preferred_element_type=jnp.float32)
        m_sc[:, h:h + 1] = m_new

    @pl.when(kv_step == pl.num_programs(2) - 1)
    def _flush():
        for h in range(n_heads):
            sl = slice(h * Dh, (h + 1) * Dh)
            inv_l = pl.reciprocal(l_sc[:, h:h + 1], approx=True)
            o_ref[0, :, sl] = (acc_sc[:, sl] * inv_l).astype(o_ref.dtype)


def attention(q_arr, q_blk, k_arr, k_blk, v_arr, v_blk, bias, n_heads, d_model,
              tq=256, tk=512):
    """Flash attention over Sk tiles.

    q_arr: (B, Sq, nq*D), k_arr/v_arr: (B, Sk, nk*D); q_blk/k_blk/v_blk select the
    D-wide column block (so fused QKV / KV slabs are consumed without HBM slicing).
    bias: (Bb, Sq, Sk) f32 with Bb in {1, B}, or None.
    """
    B, Sq, _ = q_arr.shape
    Sk = k_arr.shape[1]
    D = d_model
    tq = _tile(Sq, tq, 8)
    tk = _tile(Sk, tk, 128)
    Dh = D // n_heads
    scale = 1.0 / math.sqrt(Dh)
    grid = (B, Sq // tq, Sk // tk)
    has_bias = bias is not None

    in_specs = [
        pl.BlockSpec((1, tq, D), lambda b, i, s: (b, i, q_blk)),
        pl.BlockSpec((1, tk, D), lambda b, i, s: (b, s, k_blk)),
        pl.BlockSpec((1, tk, D), lambda b, i, s: (b, s, v_blk)),
    ]
    args = [q_arr, k_arr, v_arr]
    if has_bias:
        bstride = 1 if bias.shape[0] == B else 0   # Bb==1: same bias block for every batch
        in_specs.append(pl.BlockSpec((1, tq, tk),
                                     lambda b, i, s: (b * bstride, i, s)))
        args.append(bias)

    return pl.pallas_call(
        functools.partial(_mha_kernel, n_heads=n_heads, scale=scale,
                          has_bias=has_bias),
        out_shape=jax.ShapeDtypeStruct((B, Sq, D), q_arr.dtype),
        grid=grid,
        in_specs=in_specs,
        out_specs=pl.BlockSpec((1, tq, D), lambda b, i, s: (b, i, 0)),
        scratch_shapes=[
            pltpu.VMEM((tq, n_heads), jnp.float32),   # running max per head
            pltpu.VMEM((tq, n_heads), jnp.float32),   # running sum per head
            pltpu.VMEM((tq, D), jnp.float32),         # running output accumulator
        ],
        compiler_params=pltpu.CompilerParams(
            dimension_semantics=("parallel", "parallel", "arbitrary"),
            vmem_limit_bytes=_VMEM_LIMIT),
    )(*args)


# ----------------------------- model glue -----------------------------

def mask_to_bias(mask, B, Sq, Sk):
    """{0,1} mask -> additive bias (B or 1, Sq, Sk) f32, or None if no mask (skips the bias input)."""
    if mask is None:
        return None
    mask = jnp.asarray(mask)
    if mask.ndim == 2 and mask.shape == (B, Sk):           # key padding mask
        m = jnp.broadcast_to(mask[:, None, :], (B, Sq, Sk))
    elif mask.ndim == 2 and mask.shape == (Sq, Sk):        # causal / square mask
        m = mask[None, :, :]
    elif mask.ndim == 3:                                   # (B, Sq, Sk)
        m = mask
    else:
        m = jnp.broadcast_to(mask, (B, Sq, Sk))
    return jnp.where(m == 0, -1e9, 0.0).astype(jnp.float32)


def self_attention_block(x, p, bias, n_heads, ln_g, ln_b):
    """LN(x + SelfAttn(x)); output projection fused with residual-add + LayerNorm."""
    B, S, D = x.shape
    x_flat = x.reshape(B * S, D)
    qkv = matmul_bias(x_flat, p["wqkv"], p["bqkv"]).reshape(B, S, 3 * D)  # fused QKV
    if D % 128 == 0:
        # consume q/k/v straight out of the fused slab (no HBM slice copies)
        o = attention(qkv, 0, qkv, 1, qkv, 2, bias, n_heads, D)
    else:
        q, k, v = qkv[..., :D], qkv[..., D:2 * D], qkv[..., 2 * D:]
        o = attention(q, 0, k, 0, v, 0, bias, n_heads, D)
    return matmul_add_ln(o.reshape(B * S, D), p["wo"], p["bo"],
                         x_flat, ln_g, ln_b)                              # (B*S, D)


def cross_attention_block(y, enc, p, bias, n_heads, ln_g, ln_b):
    """LN(y + CrossAttn(y, enc)); output projection fused with residual-add + LayerNorm."""
    B, St, D = y.shape
    Ss = enc.shape[1]
    y_flat = y.reshape(B * St, D)
    q = matmul_bias(y_flat, p["wq"], p["bq"]).reshape(B, St, D)
    kv = matmul_bias(enc.reshape(B * Ss, D), p["wkv"], p["bkv"]).reshape(B, Ss, 2 * D)
    if D % 128 == 0:
        o = attention(q, 0, kv, 0, kv, 1, bias, n_heads, D)
    else:
        k, v = kv[..., :D], kv[..., D:]
        o = attention(q, 0, k, 0, v, 0, bias, n_heads, D)
    return matmul_add_ln(o.reshape(B * St, D), p["wo"], p["bo"],
                         y_flat, ln_g, ln_b)                              # (B*St, D)


def encoder_layer_fwd(x, p, src_bias, n_heads):
    # post-norm: x = LN(x + SelfAttn(x)); x = LN(x + FFN(x))  (LNs fused into producers)
    B, S, D = x.shape
    xf = self_attention_block(x, p["self_attn"], src_bias, n_heads,
                              p["ln1_g"], p["ln1_b"])
    out = ffn_add_ln(xf, p["ff_w1"], p["ff_b1"], p["ff_w2"], p["ff_b2"],
                     p["ln2_g"], p["ln2_b"])
    return out.reshape(B, S, D)


def decoder_layer_fwd(y, enc_out, p, cross_bias, tgt_bias, n_heads):
    B, St, D = y.shape
    yf = self_attention_block(y, p["self_attn"], tgt_bias, n_heads,
                              p["ln1_g"], p["ln1_b"])
    yc = cross_attention_block(yf.reshape(B, St, D), enc_out, p["cross_attn"],
                               cross_bias, n_heads, p["ln2_g"], p["ln2_b"])
    out = ffn_add_ln(yc, p["ff_w1"], p["ff_b1"], p["ff_w2"], p["ff_b2"],
                     p["ln3_g"], p["ln3_b"])
    return out.reshape(B, St, D)


def transformer_forward(params, src, tgt, encoder_attention_mask=None,
                        decoder_attention_mask=None):
    emb_w = params["embedding"]                  # (vocab, d_model) f32
    emb_bf16 = emb_w.astype(jnp.bfloat16)
    pe = params["pe"]                            # (maxlen, d_model) f32
    n_heads = params["n_heads"]
    vocab, D = emb_w.shape
    B, Ss = src.shape
    _, St = tgt.shape

    # ---- encode ----
    x = (jnp.take(emb_w, src, axis=0) + pe[:Ss][None, :, :]).astype(jnp.bfloat16)
    src_self_bias = mask_to_bias(encoder_attention_mask, B, Ss, Ss)
    for lp in params["encoder_layers"]:
        x = encoder_layer_fwd(x, lp, src_self_bias, n_heads)
    enc_out = x

    # ---- decode ----
    y = (jnp.take(emb_w, tgt, axis=0) + pe[:St][None, :, :]).astype(jnp.bfloat16)
    tgt_self_bias = mask_to_bias(decoder_attention_mask, B, St, St)
    cross_bias = mask_to_bias(encoder_attention_mask, B, St, Ss)
    for lp in params["decoder_layers"]:
        y = decoder_layer_fwd(y, enc_out, lp, cross_bias, tgt_self_bias, n_heads)

    # tied output projection: decoder_output @ embedding.weight.T
    # pre-transpose once so the MXU consumes a standard lane-dense (K, N) RHS
    emb_t = emb_bf16.T                           # (D, vocab)
    logits = matmul_bias(y.reshape(B * St, D), emb_t, None, out_dtype=jnp.float32)
    return logits.reshape(B, St, vocab)


# ----------------------------- parameter init -----------------------------

def sinusoidal_pe(maxlen, d_model):
    pos = jnp.arange(maxlen, dtype=jnp.float32)[:, None]
    i = jnp.arange(0, d_model, 2, dtype=jnp.float32)
    div = jnp.exp(-jnp.log(10000.0) * i / d_model)
    pe = jnp.zeros((maxlen, d_model), jnp.float32)
    pe = pe.at[:, 0::2].set(jnp.sin(pos * div))
    pe = pe.at[:, 1::2].set(jnp.cos(pos * div))
    return pe


def init_params(key, vocab, d_model, n_heads, n_enc, n_dec, d_ff, maxlen):
    keys = iter(jax.random.split(key, 4096))

    def dense(din, dout):
        w = (jax.random.normal(next(keys), (din, dout), jnp.float32) * 0.02
             ).astype(jnp.bfloat16)
        b = jnp.zeros((1, dout), jnp.float32)
        return w, b

    def self_attn():
        wqkv, bqkv = dense(d_model, 3 * d_model)   # fused Q,K,V projection
        wo, bo = dense(d_model, d_model)
        return dict(wqkv=wqkv, bqkv=bqkv, wo=wo, bo=bo)

    def cross_attn():
        wq, bq = dense(d_model, d_model)
        wkv, bkv = dense(d_model, 2 * d_model)     # fused K,V projection
        wo, bo = dense(d_model, d_model)
        return dict(wq=wq, bq=bq, wkv=wkv, bkv=bkv, wo=wo, bo=bo)

    def ln():
        return (jnp.ones((1, d_model), jnp.float32),
                jnp.zeros((1, d_model), jnp.float32))

    def enc_layer():
        ff_w1, ff_b1 = dense(d_model, d_ff)
        ff_w2, ff_b2 = dense(d_ff, d_model)
        g1, b1 = ln(); g2, b2 = ln()
        return dict(self_attn=self_attn(), ff_w1=ff_w1, ff_b1=ff_b1,
                    ff_w2=ff_w2, ff_b2=ff_b2,
                    ln1_g=g1, ln1_b=b1, ln2_g=g2, ln2_b=b2)

    def dec_layer():
        ff_w1, ff_b1 = dense(d_model, d_ff)
        ff_w2, ff_b2 = dense(d_ff, d_model)
        g1, b1 = ln(); g2, b2 = ln(); g3, b3 = ln()
        return dict(self_attn=self_attn(), cross_attn=cross_attn(),
                    ff_w1=ff_w1, ff_b1=ff_b1, ff_w2=ff_w2, ff_b2=ff_b2,
                    ln1_g=g1, ln1_b=b1, ln2_g=g2, ln2_b=b2, ln3_g=g3, ln3_b=b3)

    return dict(
        embedding=jax.random.normal(next(keys), (vocab, d_model), jnp.float32) * 0.02,
        pe=sinusoidal_pe(maxlen, d_model),
        n_heads=n_heads,
        encoder_layers=[enc_layer() for _ in range(n_enc)],
        decoder_layers=[dec_layer() for _ in range(n_dec)],
    )


# ----------------------------- main -----------------------------

if __name__ == "__main__":
    # d_model kept at 128 so the fused-QKV attention path uses lane-aligned
    # (multiple-of-128) column blocks; still a small demo config.
    vocab_size = 256
    d_model = 128
    n_heads = 4
    num_encoder_layers = 2
    num_decoder_layers = 2
    dim_feed_forward = 256
    maxlen = 16
    B, S_src, S_tgt = 2, 8, 8

    key = jax.random.PRNGKey(0)
    kp, ks, kt = jax.random.split(key, 3)
    params = init_params(kp, vocab_size, d_model, n_heads,
                         num_encoder_layers, num_decoder_layers,
                         dim_feed_forward, maxlen)

    src_seq = jax.random.randint(ks, (B, S_src), 0, vocab_size, dtype=jnp.int32)
    tgt_seq = jax.random.randint(kt, (B, S_tgt), 0, vocab_size, dtype=jnp.int32)

    # encoder padding mask (1 = attend, 0 = pad) and decoder causal mask
    enc_mask = jnp.ones((B, S_src), jnp.int32).at[1, -2:].set(0)
    dec_mask = jnp.tril(jnp.ones((S_tgt, S_tgt), jnp.int32))

    logits = transformer_forward(params, src_seq, tgt_seq, enc_mask, dec_mask)
    logits = jax.block_until_ready(logits)

    assert logits.shape == (B, S_tgt, vocab_size)
    assert bool(jnp.all(jnp.isfinite(logits)))
    print("KERNEL_OK")
</pallas_src>

<mosaic_0001>
module attributes {stable_mosaic.version = 11 : i64} {
  func.func @_matmul_kernel(%arg0: i32, %arg1: i32, %arg2: i32, %arg3: memref<16x128xbf16, #tpu.memory_space<vmem>>, %arg4: memref<128x384xbf16, #tpu.memory_space<vmem>>, %arg5: memref<1x384xf32, #tpu.memory_space<vmem>>, %arg6: memref<16x384xbf16, #tpu.memory_space<vmem>>, %arg7: memref<16x384xf32, #tpu.memory_space<vmem>>) attributes {dimension_semantics = [#tpu.dimension_semantics<parallel>, #tpu.dimension_semantics<parallel>, #tpu.dimension_semantics<arbitrary>], iteration_bounds = array<i64: 1, 1, 1>, scalar_prefetch = 0 : i64, scratch_operands = 1 : i64, tpu.core_type = #tpu.core_type<tc>, window_params = [{transform_indices = @transform_0, window_bounds = array<i64: 16, 128>}, {transform_indices = @transform_1, window_bounds = array<i64: 128, 384>}, {transform_indices = @transform_2, window_bounds = array<i64: 1, 384>}, {transform_indices = @transform_3, window_bounds = array<i64: 16, 384>}]} {
    %c0_i32 = arith.constant 0 : i32
    %0 = arith.cmpi eq, %arg2, %c0_i32 : i32
    %1 = arith.extui %0 : i1 to i32
    %c0_i32_0 = arith.constant 0 : i32
    %2 = arith.cmpi ne, %1, %c0_i32_0 : i32
    scf.if %2 {
      %cst_10 = arith.constant 0.000000e+00 : f32
      %12 = vector.broadcast %cst_10 : f32 to vector<16x384xf32>
      %c0_11 = arith.constant 0 : index
      %c0_12 = arith.constant 0 : index
      %13 = vector.load %arg7[%c0_11, %c0_12] : memref<16x384xf32, #tpu.memory_space<vmem>>, vector<16x384xf32>
      tpu.vector_store %arg7[%c0_11, %c0_12], %12 {strides = array<i32>} : memref<16x384xf32, #tpu.memory_space<vmem>>, vector<16x384xf32>,
    } else {
    }
    %c0 = arith.constant 0 : index
    %c0_1 = arith.constant 0 : index
    %3 = vector.load %arg7[%c0, %c0_1] : memref<16x384xf32, #tpu.memory_space<vmem>>, vector<16x384xf32>
    %c0_2 = arith.constant 0 : index
    %c0_3 = arith.constant 0 : index
    %4 = vector.load %arg3[%c0_2, %c0_3] : memref<16x128xbf16, #tpu.memory_space<vmem>>, vector<16x128xbf16>
    %c0_4 = arith.constant 0 : index
    %c0_5 = arith.constant 0 : index
    %5 = vector.load %arg4[%c0_4, %c0_5] : memref<128x384xbf16, #tpu.memory_space<vmem>>, vector<128x384xbf16>
    %cst = arith.constant dense<0.000000e+00> : vector<16x384xf32>
    %6 = tpu.matmul %4, %5, %cst {dimension_numbers = #tpu.dot_dimension_numbers<[1], [0], [0], [1], [0, 0, 1, 1], [], []>} : vector<16x128xbf16>, vector<128x384xbf16>, vector<16x384xf32> -> vector<16x384xf32>
    %7 = arith.addf %3, %6 : vector<16x384xf32>
    %c0_6 = arith.constant 0 : index
    %c0_7 = arith.constant 0 : index
    %8 = vector.load %arg7[%c0_6, %c0_7] : memref<16x384xf32, #tpu.memory_space<vmem>>, vector<16x384xf32>
    tpu.vector_store %arg7[%c0_6, %c0_7], %7 {strides = array<i32>} : memref<16x384xf32, #tpu.memory_space<vmem>>, vector<16x384xf32>,
    %c0_i32_8 = arith.constant 0 : i32
    %9 = arith.cmpi eq, %arg2, %c0_i32_8 : i32
    %10 = arith.extui %9 : i1 to i32
    %c0_i32_9 = arith.constant 0 : i32
    %11 = arith.cmpi ne, %10, %c0_i32_9 : i32
    scf.if %11 {
      %c0_10 = arith.constant 0 : index
      %c0_11 = arith.constant 0 : index
      %12 = vector.load %arg7[%c0_10, %c0_11] : memref<16x384xf32, #tpu.memory_space<vmem>>, vector<16x384xf32>
      %c0_12 = arith.constant 0 : index
      %c0_13 = arith.constant 0 : index
      %13 = vector.load %arg5[%c0_12, %c0_13] : memref<1x384xf32, #tpu.memory_space<vmem>>, vector<1x384xf32>
      %14 = vector.broadcast %13 : vector<1x384xf32> to vector<16x384xf32>
      %15 = arith.addf %12, %14 : vector<16x384xf32>
      %16 = arith.truncf %15 : vector<16x384xf32> to vector<16x384xbf16>
      %c0_14 = arith.constant 0 : index
      %c0_15 = arith.constant 0 : index
      %17 = vector.load %arg6[%c0_14, %c0_15] : memref<16x384xbf16, #tpu.memory_space<vmem>>, vector<16x384xbf16>
      tpu.vector_store %arg6[%c0_14, %c0_15], %16 {strides = array<i32>} : memref<16x384xbf16, #tpu.memory_space<vmem>>, vector<16x384xbf16>,
    } else {
    }
    return
  }
  func.func @transform_0(%arg0: i32, %arg1: i32, %arg2: i32) -> (i32, i32) {
    %c0_i32 = arith.constant 0 : i32
    return %arg0, %arg2 : i32, i32
  }
  func.func @transform_1(%arg0: i32, %arg1: i32, %arg2: i32) -> (i32, i32) {
    %c0_i32 = arith.constant 0 : i32
    return %arg2, %arg1 : i32, i32
  }
  func.func @transform_2(%arg0: i32, %arg1: i32, %arg2: i32) -> (i32, i32) {
    %c0_i32 = arith.constant 0 : i32
    %c0_i32_0 = arith.constant 0 : i32
    return %c0_i32, %arg1 : i32, i32
  }
  func.func @transform_3(%arg0: i32, %arg1: i32, %arg2: i32) -> (i32, i32) {
    %c0_i32 = arith.constant 0 : i32
    return %arg0, %arg1 : i32, i32
  }
}

</mosaic_0001>

<bundles_post_ra>
// kernel: tpu_custom_call.1
= control target key start
LH: loop header
LB: loop body
LE: loop exit
PB: predicated region body
PF: predicated region fallthrough
CT: control target
= control target key end

     0   :  { %8 = vsyncpa [#allocation4], 0  ;;  %s650_s0 = inlined_call_operand.hbm [shape: bf16[16,128], index: 0, kind: input, shape index: {}]   ;;  %s651_s1 = inlined_call_operand.hbm [shape: bf16[128,384], index: 1, kind: input, shape index: {}]   ;;  %s652_s2 = inlined_call_operand.vmem [shape: f32[1,384], index: 2, kind: input, shape index: {}]   ;;  %s653_s3 = inlined_call_operand.hbm [shape: bf16[16,384], index: 3, kind: output, shape index: {}]  }
   0x1   :  { %9 = vsyncpa [#allocation7], 0 }
   0x2   :  { %10 = vsyncpa [#allocation5], 0  ;;  %s575_s12 = smov [#allocation3]   ;;  %s503_s16 = scalar_lea.hbm %s650_s0, 128 }
   0x3   :  { %s16_s13 = sshll.u32 %s575_s12, 4  ;;  %p504_p0 = scmp.ne.s32.totalorder %s650_s0, %s503_s16  ;;  %s17_s13 = int_to_ptr.vmem [resolvable:$true] %s16_s13 }
   0x4   :  { %p507_p1 = scmp.lt.u32.totalorder %s503_s16, %s650_s0 }
   0x6   :  { %p509_p2 = pnand %p507_p1, %p504_p0 }
   0x8   :  { %512 = shalt.err (!%p509_p2)
}
   0x9   :  { %s513_s21 = scalar_lea.vmem %s17_s13, 128  ;;  %p518_p4 = scmp.lt.s32.totalorder %s17_s13, %s17_s13 }
   0xa   :  { %p514_p3 = scmp.ne.s32.totalorder %s17_s13, %s513_s21  ;;  %p519_p5 = scmp.lt.s32.totalorder %s513_s21, %s513_s21 }
   0xc   :  { %p520_p6 = por %p519_p5, %p518_p4 }
   0xe   :  { %p521_p7 = pnand %p520_p6, %p514_p3 }
  0x10   :  { %524 = shalt.err (!%p521_p7)
}
  0x11   :  { %s576_s22 = smov 64   ;;  %s577_s23 = smov 4  }
  0x12   :  { %22 = dma.hbm_to_vmem [thread:$0]  %s650_s0, 128, %s17_s13, [#allocation4], %s576_s22, %s576_s22, %s577_s23  }
  0x13   :  { %s578_s26 = smov [#allocation6]   ;;  %s525_s30 = scalar_lea.hbm %s651_s1, 3072 }
  0x14   :  { %s28_s27 = sshll.u32 %s578_s26, 4  ;;  %p526_p8 = scmp.ne.s32.totalorder %s651_s1, %s525_s30  ;;  %s29_s27 = int_to_ptr.vmem [resolvable:$true] %s28_s27 }
  0x15   :  { %p529_p9 = scmp.lt.u32.totalorder %s525_s30, %s651_s1 }
  0x17   :  { %p531_p10 = pnand %p529_p9, %p526_p8 }
  0x19   :  { %534 = shalt.err (!%p531_p10)
}
  0x1a   :  { %s535_s8 = scalar_lea.vmem %s29_s27, 3072  ;;  %p540_p12 = scmp.lt.s32.totalorder %s29_s27, %s29_s27 }
  0x1b   :  { %p536_p11 = scmp.ne.s32.totalorder %s29_s27, %s535_s8  ;;  %p541_p13 = scmp.lt.s32.totalorder %s535_s8, %s535_s8 }
  0x1d   :  { %p542_p0 = por %p541_p13, %p540_p12 }
  0x1f   :  { %p543_p1 = pnand %p542_p0, %p536_p11 }
  0x21   :  { %546 = shalt.err (!%p543_p1)
}
  0x22   :  { %s579_s0 = smov 192   ;;  %s580_s9 = smov 12  }
  0x23   :  { %34 = dma.hbm_to_vmem [thread:$0]  %s651_s1, 3072, %s29_s27, [#allocation7], %s579_s0, %s579_s0, %s580_s9  }
  0x24   :  { %569 = dma.done.wait [#allocation4], 128  }
  0x25   :  { %570 = vsyncadd [#allocation4], 4294967168 }
  0x26   :  { %571 = dma.done.wait [#allocation7], 3072  }
  0x27   :  { %572 = vsyncadd [#allocation7], 4294964224  ;;  %v581_v0 = vmov 0.0   ;;  %vm582_vm0 = vmmov 0   ;;  %v583_v1 = vmov 0   ;;  %v502_v26 = vld [vmem:[#allocation3] sm:$0xff]   ;;  %v335_v27 = vlaneseq }
  0x28   :  { %440 = vmatprep.subr.bf16.mxu1 %v581_v0  ;;  %456 = vmatprep.mubr.msk.bf16.mxu1 %vm582_vm0, %v581_v0  ;;  %v470_v2 = vld [vmem:[#allocation6 + $0x4] ss:$12 sps:$4 sm:$0xff]   ;;  %v472_v3 = vld [vmem:[#allocation6 + $0x8] ss:$12 sps:$4 sm:$0xff]   ;;  %v473_v4 = vld [vmem:[#allocation6] ss:$12 sps:$4 sm:$0xff]  }
  0x29   :  { %260 = vmatprep.mubr.bf16.mxu0 %v583_v1  ;;  %228 = vmatprep.subr.bf16.mxu0 %v470_v2  ;;  %v474_v5 = vld [vmem:[#allocation6 + $0x1c] ss:$12 sps:$4 sm:$0xff]   ;;  %v476_v6 = vld [vmem:[#allocation6 + $0x20] ss:$12 sps:$4 sm:$0xff]   ;;  %v477_v7 = vld [vmem:[#allocation6 + $0x18] ss:$12 sps:$4 sm:$0xff]  }
  0x2a   :  { %441 = vmatpush3.bf16.msra.mxu1 %v472_v3  ;;  %229 = vmatpush1.bf16.msra.mxu0 %v473_v4  ;;  %v478_v8 = vld [vmem:[#allocation6 + $0x34] ss:$12 sps:$4 sm:$0xff]   ;;  %v480_v9 = vld [vmem:[#allocation6 + $0x38] ss:$12 sps:$4 sm:$0xff]   ;;  %v481_v10 = vld [vmem:[#allocation6 + $0x30] ss:$12 sps:$4 sm:$0xff]  }
  0x2b   :  { %442 = vmatprep.subr.bf16.mxu1 %v581_v0  ;;  %230 = vmatprep.subr.bf16.mxu0 %v474_v5  ;;  %v482_v11 = vld [vmem:[#allocation6 + $0x4c] ss:$12 sps:$4 sm:$0xff]   ;;  %v484_v12 = vld [vmem:[#allocation6 + $0x50] ss:$12 sps:$4 sm:$0xff]   ;;  %v485_v13 = vld [vmem:[#allocation6 + $0x48] ss:$12 sps:$4 sm:$0xff]  }
  0x2c   :  { %v486_v14 = vld [vmem:[#allocation6 + $0x64] ss:$12 sps:$4 sm:$0xff]   ;;  %v488_v15 = vld [vmem:[#allocation6 + $0x68] ss:$12 sps:$4 sm:$0xff]   ;;  %v489_v16 = vld [vmem:[#allocation6 + $0x60] ss:$12 sps:$4 sm:$0xff]  }
  0x2d   :  { %v490_v17 = vld [vmem:[#allocation6 + $0x7c] ss:$12 sps:$4 sm:$0xff]   ;;  %v492_v18 = vld [vmem:[#allocation6 + $0x80] ss:$12 sps:$4 sm:$0xff]   ;;  %v493_v19 = vld [vmem:[#allocation6 + $0x78] ss:$12 sps:$4 sm:$0xff]  }
  0x2e   :  { %443 = vmatpush3.bf16.msra.mxu1 %v476_v6  ;;  %231 = vmatpush1.bf16.msra.mxu0 %v477_v7  ;;  %v494_v20 = vld [vmem:[#allocation6 + $0x94] ss:$12 sps:$4 sm:$0xff]   ;;  %v496_v21 = vld [vmem:[#allocation6 + $0x98] ss:$12 sps:$4 sm:$0xff]   ;;  %v497_v22 = vld [vmem:[#allocation6 + $0x90] ss:$12 sps:$4 sm:$0xff]  }
  0x2f   :  { %444 = vmatprep.subr.bf16.mxu1 %v581_v0  ;;  %232 = vmatprep.subr.bf16.mxu0 %v478_v8  ;;  %v498_v23 = vld [vmem:[#allocation6 + $0xac] ss:$12 sps:$4 sm:$0xff]   ;;  %v500_v24 = vld [vmem:[#allocation6 + $0xb0] ss:$12 sps:$4 sm:$0xff]   ;;  %v501_v25 = vld [vmem:[#allocation6 + $0xa8] ss:$12 sps:$4 sm:$0xff]  }
  0x30   :  { %v336_v28 = vshrl.u32 %v335_v27, 7  ;;  %v333_v30 = vld [vmem:[%s652_s2] sm:$0x7]  ;;  %s584_s2 = smov [#allocation8]  }
  0x31   :  { %s385_s13 = sshll.u32 %s584_s2, 4  ;;  %s386_s13 = int_to_ptr.vmem [resolvable:$true] %s385_s13 }
  0x32   :  { %445 = vmatpush3.bf16.msra.mxu1 %v480_v9  ;;  %233 = vmatpush1.bf16.msra.mxu0 %v481_v10  ;;  %v345_v29 = vsub.s32 2, %v336_v28  ;;  %v337_v31 = vsub.s32 0, %v336_v28  ;;  %v341_v32 = vsub.s32 1, %v336_v28  ;;  %s547_s14 = scalar_lea.vmem %s386_s13, 384  ;;  %p552_p3 = scmp.lt.s32.totalorder %s386_s13, %s386_s13 }
  0x33   :  { %446 = vmatprep.subr.bf16.mxu1 %v581_v0  ;;  %234 = vmatprep.subr.bf16.mxu0 %v482_v11  ;;  %p548_p2 = scmp.ne.s32.totalorder %s386_s13, %s547_s14  ;;  %p553_p4 = scmp.lt.s32.totalorder %s547_s14, %s547_s14 }
  0x34   :  { %v346_v33 = vrot.slane %v333_v30, %v345_v29  ;;  %v338_v34 = vrot.slane %v333_v30, %v337_v31  ;;  %v342_v35 = vrot.slane %v333_v30, %v341_v32 }
  0x35   :  { %p554_p5 = por %p553_p4, %p552_p3 }
  0x36   :  { %447 = vmatpush3.bf16.msra.mxu1 %v484_v12  ;;  %235 = vmatpush1.bf16.msra.mxu0 %v485_v13 }
  0x37   :  { %448 = vmatprep.subr.bf16.mxu1 %v581_v0  ;;  %236 = vmatprep.subr.bf16.mxu0 %v486_v14  ;;  %p555_p6 = pnand %p554_p5, %p548_p2 }
  0x3a   :  { %449 = vmatpush3.bf16.msra.mxu1 %v488_v15  ;;  %237 = vmatpush1.bf16.msra.mxu0 %v489_v16 }
  0x3b   :  { %450 = vmatprep.subr.bf16.mxu1 %v581_v0  ;;  %238 = vmatprep.subr.bf16.mxu0 %v490_v17 }
  0x3e   :  { %451 = vmatpush3.bf16.msra.mxu1 %v492_v18  ;;  %239 = vmatpush1.bf16.msra.mxu0 %v493_v19 }
  0x3f   :  { %452 = vmatprep.subr.bf16.mxu1 %v581_v0  ;;  %240 = vmatprep.subr.bf16.mxu0 %v494_v20 }
  0x42   :  { %453 = vmatpush3.bf16.msra.mxu1 %v496_v21  ;;  %241 = vmatpush1.bf16.msra.mxu0 %v497_v22 }
  0x43   :  { %454 = vmatprep.subr.bf16.mxu1 %v581_v0  ;;  %242 = vmatprep.subr.bf16.mxu0 %v498_v23 }
  0x46   :  { %455 = vmatpush3.bf16.msra.mxu1 %v500_v24  ;;  %243 = vmatpush1.bf16.msra.mxu0 %v501_v25 }
  0x49   :  { %457 = vmatmul.mubr.bf16.vlgmr.msra.gmra.mrb[0].mxu1 %v502_v26  ;;  %261 = vmatmul.mubr.bf16.vlgmr.msra.gmra.mrb[0].mxu0 %v502_v26 }
 0x11c   :  { %v305_v36 = vpop.f32.mrb[0].mxu1  ;;  %v262_v38 = vpop.f32.mrb[0].mxu0 }
 0x11d   :  { %v352_v37 = vadd.f32 %v346_v33, %v305_v36  ;;  %v458_v39 = vpop.f32.mrb[1].mxu1  ;;  %v350_v40 = vadd.f32 %v338_v34, %v262_v38  ;;  %v264_v41 = vpop.f32.mrb[1].mxu0 }
 0x11e   :  { %v308_v42 = vpop.f32.mrb[2].mxu1  ;;  %v351_v44 = vadd.f32 %v342_v35, %v264_v41  ;;  %v266_v46 = vpop.f32.mrb[2].mxu0 }
 0x11f   :  { %v428_v43 = vpack.c.bf16 %v352_v37, %v352_v37  ;;  %v355_v45 = vadd.f32 %v346_v33, %v308_v42  ;;  %v459_v47 = vpop.f32.mrb[3].mxu1  ;;  %v353_v48 = vadd.f32 %v338_v34, %v266_v46  ;;  %v268_v49 = vpop.f32.mrb[3].mxu0 }
 0x120   :  { %v427_v50 = vpack.c.bf16 %v351_v44, %v350_v40  ;;  %v354_v52 = vadd.f32 %v342_v35, %v268_v49 }
 0x121   :  { %377 = vst [vmem:[#allocation8 + $0x8] sm:$0xf] %v428_v43  ;;  %v430_v51 = vpack.c.bf16 %v355_v45, %v355_v45 }
 0x122   :  { %376 = vst [vmem:[#allocation8] sm:$0xff] %v427_v50  ;;  %v429_v53 = vpack.c.bf16 %v354_v52, %v353_v48 }
 0x123   :  { %379 = vst [vmem:[#allocation8 + $0x14] sm:$0xf] %v430_v51 }
 0x124   :  { %378 = vst [vmem:[#allocation8 + $0xc] sm:$0xff] %v429_v53 }
 0x125   :  { %558 = shalt.err (!%p555_p6)
}
 0x126   :  { %s559_s17 = scalar_lea.hbm %s653_s3, 384 }
 0x127   :  { %p560_p7 = scmp.ne.s32.totalorder %s653_s3, %s559_s17  ;;  %p563_p8 = scmp.lt.u32.totalorder %s559_s17, %s653_s3 }
 0x129   :  { %p565_p9 = pnand %p563_p8, %p560_p7 }
 0x12b   :  { %568 = shalt.err (!%p565_p9)
}
 0x12c   :  { %391 = dma.vmem_to_hbm [thread:$0]  %s386_s13, 384, %s653_s3, [#allocation5], %s579_s0, %s579_s0, %s580_s9  }
 0x12d   :  { %573 = dma.done.wait [#allocation5], 384  }
 0x12e   :  { %574 = vsyncadd [#allocation5], 4294966912 }
 0x12f   :  { %395 = vsyncpa [#allocation4], 1 }
 0x130   :  { %396 = vsyncpa [#allocation7], 1 }
 0x131   :  { %397 = vsyncpa [#allocation5], 1 }

</bundles_post_ra>
